<compile_context>
chip_gen: v7x
topology: tpu7x:2x2x1
jax: 0.10.0
libtpu: 0.0.40
codegen_flags: <defaults>
</compile_context>

<pallas_src>
import functools
import math

import jax
import jax.numpy as jnp
from jax.experimental import pallas as pl
from jax.experimental.pallas import tpu as pltpu


def _round_up(n, m):
    return ((n + m - 1) // m) * m


# ---------------------------------------------------------------------------
# Fused kernel: one batch tile runs the entire Linear(+Sigmoid) stack.
# refs = (x_ref, w0, b0, w1, b1, ..., w_{L-1}, b_{L-1}, o_ref)
# ---------------------------------------------------------------------------
def _fused_mlp_kernel(*refs, num_layers):
    x_ref = refs[0]
    o_ref = refs[1 + 2 * num_layers]

    # Activation enters the MXU in bf16; epilogue math stays f32.
    h = x_ref[...].astype(jnp.bfloat16)
    y = None
    for l in range(num_layers):              # static unroll over layers
        w = refs[1 + 2 * l][...]             # (din_pad, dout_pad) bf16
        b = refs[2 + 2 * l][...]             # (1, dout_pad)       f32
        y = jnp.dot(h, w, preferred_element_type=jnp.float32) + b
        if l != num_layers - 1:
            # Sigmoid on the EUP in f32, then re-pack to bf16 for the next MXU pass.
            h = jax.nn.sigmoid(y).astype(jnp.bfloat16)
    o_ref[...] = y.astype(o_ref.dtype)       # final layer: no sigmoid


# ---------------------------------------------------------------------------
# Parameter packing: pad feature dims to multiples of 128, cast weights to bf16.
# Done once at setup time (amortized across forward calls).
# ---------------------------------------------------------------------------
def pack_params(params, input_size):
    dims = [int(input_size)] + [int(w.shape[1]) for (w, _) in params]
    dims_pad = [_round_up(d, 128) for d in dims]

    flat = []
    for l, (w, b) in enumerate(params):
        wp = jnp.zeros((dims_pad[l], dims_pad[l + 1]), jnp.bfloat16)
        wp = wp.at[: dims[l], : dims[l + 1]].set(w.astype(jnp.bfloat16))
        bp = jnp.zeros((1, dims_pad[l + 1]), jnp.float32)
        bp = bp.at[:, : dims[l + 1]].set(b.astype(jnp.float32))
        flat.extend([wp, bp])

    return {"dims": tuple(dims), "dims_pad": tuple(dims_pad), "flat": tuple(flat)}


# ---------------------------------------------------------------------------
# Forward pass: one pallas_call for the whole stack.
# ---------------------------------------------------------------------------
def transform_layers_forward(x, packed, *, batch_tile=256):
    dims = packed["dims"]
    dims_pad = packed["dims_pad"]
    flat = packed["flat"]
    num_layers = len(flat) // 2

    B, din = x.shape
    assert din == dims[0], f"expected input size {dims[0]}, got {din}"

    # Batch tiling: multiples of 8 (sublane).  Large tiles amortize the ~0.35us
    # per-grid-step overhead; small batches collapse to a single tile.
    tile_b = batch_tile if B >= batch_tile else _round_up(B, 8)
    b_pad = _round_up(B, tile_b)

    # Zero-pad the input slab to (b_pad, din_pad) so loads are lane-dense.
    x_p = jnp.zeros((b_pad, dims_pad[0]), x.dtype)
    x_p = x_p.at[:B, :din].set(x)

    # BlockSpecs: activations tile over batch; weights / biases are fully resident
    # (same block index every grid step -> Pallas keeps them in VMEM, no re-DMA).
    in_specs = [pl.BlockSpec((tile_b, dims_pad[0]), lambda i: (i, 0))]
    for l in range(num_layers):
        in_specs.append(
            pl.BlockSpec((dims_pad[l], dims_pad[l + 1]), lambda i: (0, 0))
        )
        in_specs.append(pl.BlockSpec((1, dims_pad[l + 1]), lambda i: (0, 0)))
    out_spec = pl.BlockSpec((tile_b, dims_pad[-1]), lambda i: (i, 0))

    kernel = functools.partial(_fused_mlp_kernel, num_layers=num_layers)

    out_p = pl.pallas_call(
        kernel,
        out_shape=jax.ShapeDtypeStruct((b_pad, dims_pad[-1]), x.dtype),
        grid=(b_pad // tile_b,),
        in_specs=in_specs,
        out_specs=out_spec,
        compiler_params=pltpu.CompilerParams(
            # Batch tiles are independent work -> megacore sharding on v7x.
            dimension_semantics=("parallel",),
            # Explicit scoped-VMEM budget with headroom; fits v5e/v6e/v7x.
            vmem_limit_bytes=32 * 1024 * 1024,
        ),
    )(x_p, *flat)

    # Strip batch + lane padding.
    return out_p[:B, : dims[-1]]


# ---------------------------------------------------------------------------
# Init (matches PyTorch nn.Linear default uniform init shapes/bounds).
# Weights stored as (in_features, out_features), bias as (1, out_features).
# ---------------------------------------------------------------------------
def init_transform_layers(key, input_size, layer_sizes, dtype=jnp.float32):
    sizes = [input_size] + list(layer_sizes)
    params = []
    for l_id in range(len(sizes) - 1):
        fan_in, fan_out = sizes[l_id], sizes[l_id + 1]
        key, kw, kb = jax.random.split(key, 3)
        bound = 1.0 / math.sqrt(fan_in)
        w = jax.random.uniform(kw, (fan_in, fan_out), dtype, -bound, bound)
        b = jax.random.uniform(kb, (1, fan_out), dtype, -bound, bound)
        params.append((w, b))
    return params


# ---------------------------------------------------------------------------
# References.
# ---------------------------------------------------------------------------
def transform_layers_reference(x, params, mimic_bf16=True):
    n = len(params)
    h = x
    for l_id, (w, b) in enumerate(params):
        if mimic_bf16:
            y = jnp.dot(
                h.astype(jnp.bfloat16),
                w.astype(jnp.bfloat16),
                preferred_element_type=jnp.float32,
            ) + b.astype(jnp.float32)
        else:
            y = h @ w + b
        h = jax.nn.sigmoid(y) if l_id != n - 1 else y
    return h


if __name__ == "__main__":
    key = jax.random.PRNGKey(0)
    batch = 8
    input_size = 32
    layer_sizes = [64, 48, 16]

    key, kx = jax.random.split(key)
    x = jax.random.normal(kx, (batch, input_size), jnp.float32)

    params = init_transform_layers(key, input_size, layer_sizes)
    packed = pack_params(params, input_size)

    out = transform_layers_forward(x, packed)
    out = jax.block_until_ready(out)

    ref_bf16 = transform_layers_reference(x, params, mimic_bf16=True)
    ref_f32 = transform_layers_reference(x, params, mimic_bf16=False)

    assert out.shape == (batch, layer_sizes[-1])
    # Tight check against a reference using the same bf16-in / f32-accumulate recipe.
    assert jnp.allclose(out, ref_bf16, atol=5e-3, rtol=5e-3)
    # Loose sanity check against the pure-f32 math of the original module.
    assert jnp.allclose(out, ref_f32, atol=1e-1, rtol=1e-1)

    print("KERNEL_OK")
</pallas_src>

<mosaic_0001>
module attributes {stable_mosaic.version = 11 : i64} {
  func.func @_fused_mlp_kernel(%arg0: i32, %arg1: memref<8x128xf32, #tpu.memory_space<vmem>>, %arg2: memref<128x128xbf16, #tpu.memory_space<vmem>>, %arg3: memref<1x128xf32, #tpu.memory_space<vmem>>, %arg4: memref<128x128xbf16, #tpu.memory_space<vmem>>, %arg5: memref<1x128xf32, #tpu.memory_space<vmem>>, %arg6: memref<128x128xbf16, #tpu.memory_space<vmem>>, %arg7: memref<1x128xf32, #tpu.memory_space<vmem>>, %arg8: memref<8x128xf32, #tpu.memory_space<vmem>>) attributes {dimension_semantics = [#tpu.dimension_semantics<parallel>], iteration_bounds = array<i64: 1>, scalar_prefetch = 0 : i64, scratch_operands = 0 : i64, tpu.core_type = #tpu.core_type<tc>, window_params = [{transform_indices = @transform_0, window_bounds = array<i64: 8, 128>}, {pipeline_mode = #tpu.pipeline_mode<synchronous>, transform_indices = @transform_1, window_bounds = array<i64: 128, 128>}, {pipeline_mode = #tpu.pipeline_mode<synchronous>, transform_indices = @transform_2, window_bounds = array<i64: 1, 128>}, {pipeline_mode = #tpu.pipeline_mode<synchronous>, transform_indices = @transform_3, window_bounds = array<i64: 128, 128>}, {pipeline_mode = #tpu.pipeline_mode<synchronous>, transform_indices = @transform_4, window_bounds = array<i64: 1, 128>}, {pipeline_mode = #tpu.pipeline_mode<synchronous>, transform_indices = @transform_5, window_bounds = array<i64: 128, 128>}, {pipeline_mode = #tpu.pipeline_mode<synchronous>, transform_indices = @transform_6, window_bounds = array<i64: 1, 128>}, {transform_indices = @transform_7, window_bounds = array<i64: 8, 128>}]} {
    %c0 = arith.constant 0 : index
    %c0_0 = arith.constant 0 : index
    %0 = vector.load %arg1[%c0, %c0_0] : memref<8x128xf32, #tpu.memory_space<vmem>>, vector<8x128xf32>
    %1 = arith.truncf %0 : vector<8x128xf32> to vector<8x128xbf16>
    %c0_1 = arith.constant 0 : index
    %c0_2 = arith.constant 0 : index
    %2 = vector.load %arg2[%c0_1, %c0_2] : memref<128x128xbf16, #tpu.memory_space<vmem>>, vector<128x128xbf16>
    %c0_3 = arith.constant 0 : index
    %c0_4 = arith.constant 0 : index
    %3 = vector.load %arg3[%c0_3, %c0_4] : memref<1x128xf32, #tpu.memory_space<vmem>>, vector<1x128xf32>
    %cst = arith.constant dense<0.000000e+00> : vector<8x128xf32>
    %4 = tpu.matmul %1, %2, %cst {dimension_numbers = #tpu.dot_dimension_numbers<[1], [0], [0], [1], [0, 0, 1, 1], [], []>} : vector<8x128xbf16>, vector<128x128xbf16>, vector<8x128xf32> -> vector<8x128xf32>
    %5 = vector.broadcast %3 : vector<1x128xf32> to vector<8x128xf32>
    %6 = arith.addf %4, %5 : vector<8x128xf32>
    %7 = arith.negf %6 : vector<8x128xf32>
    %8 = math.exp %7 : vector<8x128xf32>
    %cst_5 = arith.constant 1.000000e+00 : f32
    %9 = vector.broadcast %cst_5 : f32 to vector<8x128xf32>
    %10 = arith.addf %9, %8 : vector<8x128xf32>
    %11 = arith.divf %9, %10 : vector<8x128xf32>
    %12 = arith.truncf %11 : vector<8x128xf32> to vector<8x128xbf16>
    %c0_6 = arith.constant 0 : index
    %c0_7 = arith.constant 0 : index
    %13 = vector.load %arg4[%c0_6, %c0_7] : memref<128x128xbf16, #tpu.memory_space<vmem>>, vector<128x128xbf16>
    %c0_8 = arith.constant 0 : index
    %c0_9 = arith.constant 0 : index
    %14 = vector.load %arg5[%c0_8, %c0_9] : memref<1x128xf32, #tpu.memory_space<vmem>>, vector<1x128xf32>
    %cst_10 = arith.constant dense<0.000000e+00> : vector<8x128xf32>
    %15 = tpu.matmul %12, %13, %cst_10 {dimension_numbers = #tpu.dot_dimension_numbers<[1], [0], [0], [1], [0, 0, 1, 1], [], []>} : vector<8x128xbf16>, vector<128x128xbf16>, vector<8x128xf32> -> vector<8x128xf32>
    %16 = vector.broadcast %14 : vector<1x128xf32> to vector<8x128xf32>
    %17 = arith.addf %15, %16 : vector<8x128xf32>
    %18 = arith.negf %17 : vector<8x128xf32>
    %19 = math.exp %18 : vector<8x128xf32>
    %cst_11 = arith.constant 1.000000e+00 : f32
    %20 = vector.broadcast %cst_11 : f32 to vector<8x128xf32>
    %21 = arith.addf %20, %19 : vector<8x128xf32>
    %22 = arith.divf %20, %21 : vector<8x128xf32>
    %23 = arith.truncf %22 : vector<8x128xf32> to vector<8x128xbf16>
    %c0_12 = arith.constant 0 : index
    %c0_13 = arith.constant 0 : index
    %24 = vector.load %arg6[%c0_12, %c0_13] : memref<128x128xbf16, #tpu.memory_space<vmem>>, vector<128x128xbf16>
    %c0_14 = arith.constant 0 : index
    %c0_15 = arith.constant 0 : index
    %25 = vector.load %arg7[%c0_14, %c0_15] : memref<1x128xf32, #tpu.memory_space<vmem>>, vector<1x128xf32>
    %cst_16 = arith.constant dense<0.000000e+00> : vector<8x128xf32>
    %26 = tpu.matmul %23, %24, %cst_16 {dimension_numbers = #tpu.dot_dimension_numbers<[1], [0], [0], [1], [0, 0, 1, 1], [], []>} : vector<8x128xbf16>, vector<128x128xbf16>, vector<8x128xf32> -> vector<8x128xf32>
    %27 = vector.broadcast %25 : vector<1x128xf32> to vector<8x128xf32>
    %28 = arith.addf %26, %27 : vector<8x128xf32>
    %c0_17 = arith.constant 0 : index
    %c0_18 = arith.constant 0 : index
    %29 = vector.load %arg8[%c0_17, %c0_18] : memref<8x128xf32, #tpu.memory_space<vmem>>, vector<8x128xf32>
    tpu.vector_store %arg8[%c0_17, %c0_18], %28 {strides = array<i32>} : memref<8x128xf32, #tpu.memory_space<vmem>>, vector<8x128xf32>,
    return
  }
  func.func @transform_0(%arg0: i32) -> (i32, i32) {
    %c0_i32 = arith.constant 0 : i32
    %c0_i32_0 = arith.constant 0 : i32
    return %arg0, %c0_i32 : i32, i32
  }
  func.func @transform_1(%arg0: i32) -> (i32, i32) {
    %c0_i32 = arith.constant 0 : i32
    %c0_i32_0 = arith.constant 0 : i32
    %c0_i32_1 = arith.constant 0 : i32
    return %c0_i32, %c0_i32_0 : i32, i32
  }
  func.func @transform_2(%arg0: i32) -> (i32, i32) {
    %c0_i32 = arith.constant 0 : i32
    %c0_i32_0 = arith.constant 0 : i32
    %c0_i32_1 = arith.constant 0 : i32
    return %c0_i32, %c0_i32_0 : i32, i32
  }
  func.func @transform_3(%arg0: i32) -> (i32, i32) {
    %c0_i32 = arith.constant 0 : i32
    %c0_i32_0 = arith.constant 0 : i32
    %c0_i32_1 = arith.constant 0 : i32
    return %c0_i32, %c0_i32_0 : i32, i32
  }
  func.func @transform_4(%arg0: i32) -> (i32, i32) {
    %c0_i32 = arith.constant 0 : i32
    %c0_i32_0 = arith.constant 0 : i32
    %c0_i32_1 = arith.constant 0 : i32
    return %c0_i32, %c0_i32_0 : i32, i32
  }
  func.func @transform_5(%arg0: i32) -> (i32, i32) {
    %c0_i32 = arith.constant 0 : i32
    %c0_i32_0 = arith.constant 0 : i32
    %c0_i32_1 = arith.constant 0 : i32
    return %c0_i32, %c0_i32_0 : i32, i32
  }
  func.func @transform_6(%arg0: i32) -> (i32, i32) {
    %c0_i32 = arith.constant 0 : i32
    %c0_i32_0 = arith.constant 0 : i32
    %c0_i32_1 = arith.constant 0 : i32
    return %c0_i32, %c0_i32_0 : i32, i32
  }
  func.func @transform_7(%arg0: i32) -> (i32, i32) {
    %c0_i32 = arith.constant 0 : i32
    %c0_i32_0 = arith.constant 0 : i32
    return %arg0, %c0_i32 : i32, i32
  }
}

</mosaic_0001>

<bundles_post_ra>
// kernel: tpu_custom_call.1
= control target key start
LH: loop header
LB: loop body
LE: loop exit
PB: predicated region body
PF: predicated region fallthrough
CT: control target
= control target key end

     0   :  { %12 = vsyncpa [#allocation3], 0  ;;  %s880_s0 = inlined_call_operand.hbm [shape: f32[8,128], index: 0, kind: input, shape index: {}]   ;;  %s881_s1 = inlined_call_operand.hbm [shape: bf16[128,128], index: 1, kind: input, shape index: {}]   ;;  %s882_s2 = inlined_call_operand.vmem [shape: f32[1,128], index: 2, kind: input, shape index: {}]   ;;  %s883_s3 = inlined_call_operand.hbm [shape: bf16[128,128], index: 3, kind: input, shape index: {}]   ;;  %s884_s4 = inlined_call_operand.vmem [shape: f32[1,128], index: 4, kind: input, shape index: {}]   ;;  %s885_s5 = inlined_call_operand.hbm [shape: bf16[128,128], index: 5, kind: input, shape index: {}]   ;;  %s886_s6 = inlined_call_operand.vmem [shape: f32[1,128], index: 6, kind: input, shape index: {}]   ;;  %s887_s7 = inlined_call_operand.hbm [shape: f32[8,128], index: 7, kind: output, shape index: {}]  }
   0x1   :  { %13 = vsyncpa [#allocation6], 0 }
   0x2   :  { %14 = vsyncpa [#allocation9], 0 }
   0x3   :  { %15 = vsyncpa [#allocation4], 0  ;;  %s723_s24 = smov [#allocation5]   ;;  %s605_s28 = scalar_lea.hbm %s881_s1, 1024 }
   0x4   :  { %s31_s25 = sshll.u32 %s723_s24, 4  ;;  %p606_p0 = scmp.ne.s32.totalorder %s881_s1, %s605_s28  ;;  %s32_s25 = int_to_ptr.vmem [resolvable:$true] %s31_s25 }
   0x5   :  { %p609_p1 = scmp.lt.u32.totalorder %s605_s28, %s881_s1 }
   0x7   :  { %p611_p2 = pnand %p609_p1, %p606_p0 }
   0x9   :  { %614 = shalt.err (!%p611_p2)
}
   0xa   :  { %s615_s10 = scalar_lea.vmem %s32_s25, 1024  ;;  %p620_p4 = scmp.lt.s32.totalorder %s32_s25, %s32_s25 }
   0xb   :  { %p616_p3 = scmp.ne.s32.totalorder %s32_s25, %s615_s10  ;;  %p621_p5 = scmp.lt.s32.totalorder %s615_s10, %s615_s10 }
   0xd   :  { %p622_p6 = por %p621_p5, %p620_p4 }
   0xf   :  { %p623_p7 = pnand %p622_p6, %p616_p3 }
  0x11   :  { %626 = shalt.err (!%p623_p7)
}
  0x12   :  { %s724_s11 = smov 64   ;;  %s725_s12 = smov 4  }
  0x13   :  { %37 = dma.hbm_to_vmem [thread:$0]  %s881_s1, 1024, %s32_s25, [#allocation6], %s724_s11, %s724_s11, %s725_s12  }
  0x14   :  { %s726_s15 = smov [#allocation2]   ;;  %s727_s17 = smov [#allocation7]  }
  0x15   :  { %s22_s16 = sshll.u32 %s726_s15, 4  ;;  %s45_s18 = sshll.u32 %s727_s17, 4  ;;  %s23_s16 = int_to_ptr.vmem [resolvable:$true] %s22_s16  ;;  %s46_s18 = int_to_ptr.vmem [resolvable:$true] %s45_s18 }
  0x16   :  { %s627_s21 = scalar_lea.hbm %s880_s0, 128 }
  0x17   :  { %p628_p8 = scmp.ne.s32.totalorder %s880_s0, %s627_s21  ;;  %p631_p9 = scmp.lt.u32.totalorder %s627_s21, %s880_s0 }
  0x19   :  { %p633_p10 = pnand %p631_p9, %p628_p8 }
  0x1b   :  { %636 = shalt.err (!%p633_p10)
}
  0x1c   :  { %s637_s1 = scalar_lea.vmem %s23_s16, 128  ;;  %p642_p12 = scmp.lt.s32.totalorder %s23_s16, %s23_s16 }
  0x1d   :  { %p638_p11 = scmp.ne.s32.totalorder %s23_s16, %s637_s1  ;;  %p643_p13 = scmp.lt.s32.totalorder %s637_s1, %s637_s1 }
  0x1f   :  { %p644_p0 = por %p643_p13, %p642_p12 }
  0x21   :  { %p645_p1 = pnand %p644_p0, %p638_p11 }
  0x23   :  { %648 = shalt.err (!%p645_p1)
}
  0x24   :  { %25 = dma.hbm_to_vmem [thread:$0]  %s880_s0, 128, %s23_s16, [#allocation3]  }
  0x25   :  { %s649_s30 = scalar_lea.hbm %s883_s3, 1024 }
  0x26   :  { %p650_p2 = scmp.ne.s32.totalorder %s883_s3, %s649_s30  ;;  %p653_p3 = scmp.lt.u32.totalorder %s649_s30, %s883_s3 }
  0x28   :  { %p655_p4 = pnand %p653_p3, %p650_p2 }
  0x2a   :  { %658 = shalt.err (!%p655_p4)
}
  0x2b   :  { %s659_s14 = scalar_lea.vmem %s46_s18, 1024  ;;  %p664_p6 = scmp.lt.s32.totalorder %s46_s18, %s46_s18 }
  0x2c   :  { %p660_p5 = scmp.ne.s32.totalorder %s46_s18, %s659_s14  ;;  %p665_p7 = scmp.lt.s32.totalorder %s659_s14, %s659_s14 }
  0x2e   :  { %p666_p8 = por %p665_p7, %p664_p6 }
  0x30   :  { %p667_p9 = pnand %p666_p8, %p660_p5 }
  0x32   :  { %670 = shalt.err (!%p667_p9)
}
  0x33   :  { %51 = dma.hbm_to_vmem [thread:$0]  %s883_s3, 1024, %s46_s18, [#allocation6], %s724_s11, %s724_s11, %s725_s12  }
  0x34   :  { %s728_s16 = smov [#allocation8]   ;;  %s671_s21 = scalar_lea.hbm %s885_s5, 1024 }
  0x35   :  { %s59_s17 = sshll.u32 %s728_s16, 4  ;;  %p672_p10 = scmp.ne.s32.totalorder %s885_s5, %s671_s21  ;;  %s60_s17 = int_to_ptr.vmem [resolvable:$true] %s59_s17 }
  0x36   :  { %p675_p11 = scmp.lt.u32.totalorder %s671_s21, %s885_s5 }
  0x38   :  { %p677_p12 = pnand %p675_p11, %p672_p10 }
  0x3a   :  { %680 = shalt.err (!%p677_p12)
}
  0x3b   :  { %s681_s1 = scalar_lea.vmem %s60_s17, 1024  ;;  %p686_p0 = scmp.lt.s32.totalorder %s60_s17, %s60_s17 }
  0x3c   :  { %p682_p13 = scmp.ne.s32.totalorder %s60_s17, %s681_s1  ;;  %p687_p1 = scmp.lt.s32.totalorder %s681_s1, %s681_s1 }
  0x3e   :  { %p688_p2 = por %p687_p1, %p686_p0 }
  0x40   :  { %p689_p3 = pnand %p688_p2, %p682_p13 }
  0x42   :  { %692 = shalt.err (!%p689_p3)
}
  0x43   :  { %65 = dma.hbm_to_vmem [thread:$0]  %s885_s5, 1024, %s60_s17, [#allocation9], %s724_s11, %s724_s11, %s725_s12  }
  0x44   :  { %715 = dma.done.wait [#allocation3], 128  }
  0x45   :  { %716 = vsyncadd [#allocation3], 4294967168 }
  0x46   :  { %717 = dma.done.wait [#allocation6], 2048  }
  0x47   :  { %718 = vsyncadd [#allocation6], 4294965248 }
  0x48   :  { %719 = dma.done.wait [#allocation9], 1024  }
  0x49   :  { %720 = vsyncadd [#allocation9], 4294966272  ;;  %v729_v0 = vmov 0.0   ;;  %vm730_vm0 = vmmov 0   ;;  %v573_v1 = vld [vmem:[#allocation5] sm:$0xff]   ;;  %v574_v2 = vld [vmem:[#allocation5 + $0x8] sm:$0xff]  }
  0x4a   :  { %504 = vmatprep.subr.bf16.mxu0 %v729_v0  ;;  %520 = vmatprep.mubr.msk.bf16.mxu0 %vm730_vm0, %v729_v0  ;;  %v575_v3 = vld [vmem:[#allocation5 + $0x10] sm:$0xff]   ;;  %v576_v4 = vld [vmem:[#allocation5 + $0x18] sm:$0xff]   ;;  %v577_v5 = vld [vmem:[#allocation5 + $0x20] sm:$0xff]   ;;  %s731_s28 = smov [#allocation10]  }
  0x4b   :  { %524 = vmatprep.subr.bf16.mxu1 %v729_v0  ;;  %540 = vmatprep.mubr.msk.bf16.mxu1 %vm730_vm0, %v729_v0  ;;  %v578_v6 = vld [vmem:[#allocation5 + $0x28] sm:$0xff]   ;;  %v579_v7 = vld [vmem:[#allocation5 + $0x30] sm:$0xff]   ;;  %v580_v8 = vld [vmem:[#allocation5 + $0x38] sm:$0xff]   ;;  %s437_s29 = sshll.u32 %s731_s28, 4  ;;  %s438_s29 = int_to_ptr.vmem [resolvable:$true] %s437_s29 }
  0x4c   :  { %505 = vmatpush3.bf16.msra.mxu0 %v573_v1  ;;  %v81_v9 = vld [vmem:[#allocation2] sm:$0xff]  ;;  %v581_v11 = vld [vmem:[#allocation7] sm:$0xff]   ;;  %v582_v12 = vld [vmem:[#allocation7 + $0x8] sm:$0xff]   ;;  %p698_p5 = scmp.lt.s32.totalorder %s438_s29, %s438_s29 }
  0x4d   :  { %506 = vmatprep.subr.bf16.mxu0 %v729_v0  ;;  %v82_v10 = vpack.c.bf16 %v81_v9, %v81_v9  ;;  %525 = vmatpush3.bf16.msra.mxu1 %v581_v11  ;;  %v583_v13 = vld [vmem:[#allocation7 + $0x10] sm:$0xff]   ;;  %v584_v14 = vld [vmem:[#allocation7 + $0x18] sm:$0xff]   ;;  %v585_v15 = vld [vmem:[#allocation7 + $0x20] sm:$0xff]  }
  0x4e   :  { %526 = vmatprep.subr.bf16.mxu1 %v729_v0  ;;  %v586_v16 = vld [vmem:[#allocation7 + $0x28] sm:$0xff]   ;;  %v587_v17 = vld [vmem:[#allocation7 + $0x30] sm:$0xff]   ;;  %v588_v18 = vld [vmem:[#allocation7 + $0x38] sm:$0xff]  }
  0x4f   :  { %v448_v19 = vld [vmem:[%s882_s2] ss:$0 sm:$0xff]  ;;  %v589_v30 = vld [vmem:[#allocation8] sm:$0xff]   ;;  %v590_v31 = vld [vmem:[#allocation8 + $0x8] sm:$0xff]  }
  0x50   :  { %507 = vmatpush3.bf16.msra.mxu0 %v574_v2  ;;  %v591_v32 = vld [vmem:[#allocation8 + $0x10] sm:$0xff]   ;;  %v592_v33 = vld [vmem:[#allocation8 + $0x18] sm:$0xff]   ;;  %v593_v34 = vld [vmem:[#allocation8 + $0x20] sm:$0xff]  }
  0x51   :  { %508 = vmatprep.subr.bf16.mxu0 %v729_v0  ;;  %527 = vmatpush3.bf16.msra.mxu1 %v582_v12  ;;  %v594_v35 = vld [vmem:[#allocation8 + $0x28] sm:$0xff]   ;;  %v595_v36 = vld [vmem:[#allocation8 + $0x30] sm:$0xff]   ;;  %v596_v37 = vld [vmem:[#allocation8 + $0x38] sm:$0xff]  }
  0x52   :  { %528 = vmatprep.subr.bf16.mxu1 %v729_v0  ;;  %v458_v38 = vld [vmem:[%s884_s4] ss:$0 sm:$0xff]  ;;  %s693_s4 = scalar_lea.vmem %s438_s29, 128 }
  0x53   :  { %v468_v49 = vld [vmem:[%s886_s6] ss:$0 sm:$0xff]  ;;  %p694_p4 = scmp.ne.s32.totalorder %s438_s29, %s693_s4  ;;  %p699_p6 = scmp.lt.s32.totalorder %s693_s4, %s693_s4 }
  0x54   :  { %509 = vmatpush3.bf16.msra.mxu0 %v575_v3 }
  0x55   :  { %510 = vmatprep.subr.bf16.mxu0 %v729_v0  ;;  %529 = vmatpush3.bf16.msra.mxu1 %v583_v13  ;;  %p700_p7 = por %p699_p6, %p698_p5 }
  0x56   :  { %530 = vmatprep.subr.bf16.mxu1 %v729_v0 }
  0x57   :  { %p701_p8 = pnand %p700_p7, %p694_p4 }
  0x58   :  { %511 = vmatpush3.bf16.msra.mxu0 %v576_v4 }
  0x59   :  { %512 = vmatprep.subr.bf16.mxu0 %v729_v0  ;;  %531 = vmatpush3.bf16.msra.mxu1 %v584_v14 }
  0x5a   :  { %532 = vmatprep.subr.bf16.mxu1 %v729_v0 }
  0x5c   :  { %513 = vmatpush3.bf16.msra.mxu0 %v577_v5 }
  0x5d   :  { %514 = vmatprep.subr.bf16.mxu0 %v729_v0  ;;  %533 = vmatpush3.bf16.msra.mxu1 %v585_v15 }
  0x5e   :  { %534 = vmatprep.subr.bf16.mxu1 %v729_v0 }
  0x60   :  { %515 = vmatpush3.bf16.msra.mxu0 %v578_v6 }
  0x61   :  { %516 = vmatprep.subr.bf16.mxu0 %v729_v0  ;;  %535 = vmatpush3.bf16.msra.mxu1 %v586_v16 }
  0x62   :  { %536 = vmatprep.subr.bf16.mxu1 %v729_v0 }
  0x64   :  { %517 = vmatpush3.bf16.msra.mxu0 %v579_v7 }
  0x65   :  { %518 = vmatprep.subr.bf16.mxu0 %v729_v0  ;;  %537 = vmatpush3.bf16.msra.mxu1 %v587_v17 }
  0x66   :  { %538 = vmatprep.subr.bf16.mxu1 %v729_v0 }
  0x68   :  { %519 = vmatpush3.bf16.msra.mxu0 %v580_v8 }
  0x69   :  { %544 = vmatprep.subr.bf16.mxu0 %v729_v0  ;;  %539 = vmatpush3.bf16.msra.mxu1 %v588_v18 }
  0x6b   :  { %521 = vmatmul.mubr.bf16.vlgmr.msra.gmra.mrb[0].mxu0 %v82_v10 }
  0x6c   :  { %560 = vmatprep.mubr.msk.bf16.mxu0 %vm730_vm0, %v729_v0  ;;  %545 = vmatpush3.bf16.msra.mxu0 %v589_v30 }
  0x6d   :  { %546 = vmatprep.subr.bf16.mxu0 %v729_v0 }
  0x70   :  { %547 = vmatpush3.bf16.msra.mxu0 %v590_v31 }
  0x71   :  { %548 = vmatprep.subr.bf16.mxu0 %v729_v0 }
  0x74   :  { %549 = vmatpush3.bf16.msra.mxu0 %v591_v32 }
  0x75   :  { %550 = vmatprep.subr.bf16.mxu0 %v729_v0 }
  0x78   :  { %551 = vmatpush3.bf16.msra.mxu0 %v592_v33 }
  0x79   :  { %552 = vmatprep.subr.bf16.mxu0 %v729_v0 }
  0x7c   :  { %553 = vmatpush3.bf16.msra.mxu0 %v593_v34 }
  0x7d   :  { %554 = vmatprep.subr.bf16.mxu0 %v729_v0 }
  0x80   :  { %555 = vmatpush3.bf16.msra.mxu0 %v594_v35 }
  0x81   :  { %556 = vmatprep.subr.bf16.mxu0 %v729_v0 }
  0x84   :  { %557 = vmatpush3.bf16.msra.mxu0 %v595_v36 }
  0x85   :  { %558 = vmatprep.subr.bf16.mxu0 %v729_v0 }
  0x88   :  { %559 = vmatpush3.bf16.msra.mxu0 %v596_v37 }
 0x13e   :  { %v188_v20 = vpop.f32.mrb[0].mxu0 }
 0x13f   :  { %v189_v21 = vadd.f32 %v448_v19, %v188_v20  ;;  %v522_v22 = vpop.f32.mrb[1].mxu0 }
 0x140   :  { %v191_v23 = vpop.f32.mrb[2].mxu0 }
 0x141   :  { %v457_v24 = vmul.f32 -1.442695, %v189_v21  ;;  %v523_v25 = vpop.f32.mrb[3].mxu0 }
 0x143   :  { %597 = vpow2.f32 %v457_v24 }
 0x14d   :  { %v598_v26 = vpop.eup %597 }
 0x14e   :  { %v197_v27 = vadd.f32 1.0, %v598_v26 }
 0x150   :  { %599 = vrcp.f32 %v197_v27 }
 0x15a   :  { %v600_v28 = vpop.eup %599 }
 0x15b   :  { %v200_v29 = vpack.c.bf16 %v600_v28, %v600_v28 }
 0x15d   :  { %541 = vmatmul.mubr.bf16.vlgmr.msra.gmra.mrb[0].mxu1 %v200_v29 }
 0x230   :  { %v306_v39 = vpop.f32.mrb[0].mxu1 }
 0x231   :  { %v307_v40 = vadd.f32 %v458_v38, %v306_v39  ;;  %v542_v41 = vpop.f32.mrb[1].mxu1 }
 0x232   :  { %v309_v42 = vpop.f32.mrb[2].mxu1 }
 0x233   :  { %v467_v43 = vmul.f32 -1.442695, %v307_v40  ;;  %v543_v44 = vpop.f32.mrb[3].mxu1 }
 0x235   :  { %601 = vpow2.f32 %v467_v43 }
 0x23f   :  { %v602_v45 = vpop.eup %601 }
 0x240   :  { %v315_v46 = vadd.f32 1.0, %v602_v45 }
 0x242   :  { %603 = vrcp.f32 %v315_v46 }
 0x24c   :  { %v604_v47 = vpop.eup %603 }
 0x24d   :  { %v318_v48 = vpack.c.bf16 %v604_v47, %v604_v47 }
 0x24f   :  { %561 = vmatmul.mubr.bf16.vlgmr.msra.gmra.mrb[4].mxu0 %v318_v48 }
 0x322   :  { %v424_v50 = vpop.f32.mrb[4].mxu0 }
 0x323   :  { %v425_v51 = vadd.f32 %v468_v49, %v424_v50  ;;  %v562_v52 = vpop.f32.mrb[5].mxu0 }
 0x324   :  { %v427_v53 = vpop.f32.mrb[6].mxu0 }
 0x325   :  { %430 = vst [vmem:[#allocation10] sm:$0xff] %v425_v51  ;;  %v563_v54 = vpop.f32.mrb[7].mxu0 }
 0x326   :  { %704 = shalt.err (!%p701_p8)
}
 0x327   :  { %s705_s6 = scalar_lea.hbm %s887_s7, 128 }
 0x328   :  { %p706_p9 = scmp.ne.s32.totalorder %s887_s7, %s705_s6  ;;  %p709_p10 = scmp.lt.u32.totalorder %s705_s6, %s887_s7 }
 0x32a   :  { %p711_p11 = pnand %p709_p10, %p706_p9 }
 0x32c   :  { %714 = shalt.err (!%p711_p11)
}
 0x32d   :  { %440 = dma.vmem_to_hbm [thread:$0]  %s438_s29, 128, %s887_s7, [#allocation4]  }
 0x32e   :  { %721 = dma.done.wait [#allocation4], 128  }
 0x32f   :  { %722 = vsyncadd [#allocation4], 4294967168 }
 0x330   :  { %444 = vsyncpa [#allocation3], 1 }
 0x331   :  { %445 = vsyncpa [#allocation6], 1 }
 0x332   :  { %446 = vsyncpa [#allocation9], 1 }
 0x333   :  { %447 = vsyncpa [#allocation4], 1 }

</bundles_post_ra>
